<compile_context>
chip_gen: v5e
topology: v5e:2x2
jax: 0.10.0
libtpu: 0.0.40
codegen_flags: <defaults>
</compile_context>

<pallas_src>
import functools

import jax
import jax.numpy as jnp
from jax.experimental import pallas as pl
from jax.experimental.pallas import tpu as pltpu

HID_DIM = 32
N_HEADS = 4
HEAD_DIM = HID_DIM // N_HEADS
PF_DIM = 64
LN_EPS = 1e-5          # nn.LayerNorm default
MASK_FILL = -1e10      # masked_fill value in the reference module

assert HID_DIM % N_HEADS == 0


def _layer_norm(x, gamma, beta):
    mu = jnp.mean(x, axis=-1, keepdims=True)
    var = jnp.mean((x - mu) ** 2, axis=-1, keepdims=True)
    return (x - mu) * jax.lax.rsqrt(var + LN_EPS) * gamma + beta


# ----------------------------------------------------------------------------
# Fused EncoderLayer kernel: one grid step for the whole (B, S) batch.
# ----------------------------------------------------------------------------
def _encoder_layer_kernel(x_ref, bias_ref, w_ref, v_ref, o_ref, *, norm_first):
    H, P, NH, HD = HID_DIM, PF_DIM, N_HEADS, HEAD_DIM
    N = x_ref.shape[0]                       # B*S folded token axis

    x = x_ref[...]                           # (N, H) row-major tokens
    mask_bias = bias_ref[...]                # (1, N, N): 0 / -1e10 (pad + cross-batch)

    # Packed parameter slabs: static sublane-aligned, lane-0 slices.
    r1, r2, r3, r4, r5 = 3 * H, 4 * H, 5 * H, 5 * H + P, 8 * H + P
    wqkv_t = w_ref[0:r1, 0:H]                # (3H, H) fused QKV (Q rows pre-scaled)
    wo     = w_ref[r1:r2, 0:H]               # (H, H)   [in, out]
    w1     = w_ref[r2:r3, 0:P]               # (H, P)
    w2     = w_ref[r3:r4, 0:H]               # (P, H)
    bqkv   = w_ref[r4:r5, 0:1]               # (3H, 1) fused QKV bias column

    bo  = v_ref[0:1, 0:H]                    # fc_o bias
    g1  = v_ref[1:2, 0:H]                    # norm1 gamma
    be1 = v_ref[2:3, 0:H]                    # norm1 beta
    b1  = v_ref[3:4, 0:P]                    # fc_1 bias
    b2  = v_ref[4:5, 0:H]                    # fc_2 bias
    g2  = v_ref[5:6, 0:H]                    # norm2 gamma
    be2 = v_ref[6:7, 0:H]                    # norm2 beta

    def self_attention(inp):                 # inp: (N, H)
        # Fused QKV projection straight into feature-major layout (3H, N):
        # contract over H (A @ B^T form) -> no activation transpose needed.
        qkv_t = jnp.einsum("oh,nh->on", wqkv_t, inp,
                           preferred_element_type=jnp.float32) + bqkv   # (3H, N)
        t = qkv_t.reshape(3 * NH, HD, N)      # sublane-aligned head split (free)
        q3 = jnp.swapaxes(t[:NH], 1, 2)       # (NH, N, HD) -- small transpose
        k3 = t[NH:2 * NH]                     # (NH, HD, N) natural layout
        v3 = t[2 * NH:]                       # (NH, HD, N)

        # 1/sqrt(head_dim) already folded into wq/bq; additive -1e10 mask is
        # numerically identical to masked_fill(-1e10) after softmax.
        e = jnp.einsum("hqd,hdk->hqk", q3, k3,
                       preferred_element_type=jnp.float32) + mask_bias  # (NH, N, N)
        e = e - jnp.max(e, axis=-1, keepdims=True)
        p = jnp.exp(e)
        a = p * pl.reciprocal(jnp.sum(p, axis=-1, keepdims=True), approx=True)
        ctx_t = jnp.einsum("hdk,hqk->hdq", v3, a,
                           preferred_element_type=jnp.float32)          # (NH, HD, N)
        ctx = ctx_t.reshape(H, N).T           # the ONE transpose back to row-major
        return jnp.dot(ctx, wo, preferred_element_type=jnp.float32) + bo

    def feed_forward(inp):
        h = jnp.dot(inp, w1, preferred_element_type=jnp.float32) + b1
        h = jnp.maximum(h, 0.0)               # relu
        return jnp.dot(h, w2, preferred_element_type=jnp.float32) + b2

    # Dropout layers are identity (inference).
    if norm_first:
        y = x + self_attention(_layer_norm(x, g1, be1))
        out = y + feed_forward(_layer_norm(y, g2, be2))
    else:
        y = _layer_norm(x + self_attention(x), g1, be1)
        out = _layer_norm(y + feed_forward(y), g2, be2)

    o_ref[...] = out


def encoder_layer(src, src_mask, params, norm_first=False):
    """src: (B,S,H) f32; src_mask: (B,1,1,S) int (1 = valid, 0 = pad)."""
    B, S, H = src.shape
    assert H == HID_DIM
    N = B * S

    x2d = src.reshape(N, H)                  # free layout-preserving reshape

    # Additive attention-mask bias over the folded token axis: 0 where query
    # and key share a batch AND the key is valid, -1e10 otherwise.  Cross-
    # batch / padded keys underflow to exactly 0 after softmax, matching the
    # reference masked_fill(-1e10) per-batch attention.
    key_valid = (src_mask.reshape(B, S) != 0).reshape(N)
    batch_id = jnp.arange(N, dtype=jnp.int32) // S
    valid = (batch_id[:, None] == batch_id[None, :]) & key_valid[None, :]
    mask_bias = jnp.where(valid, 0.0, MASK_FILL).astype(jnp.float32)[None]  # (1,N,N)

    wslab, vslab = params["wslab"], params["vslab"]

    out2d = pl.pallas_call(
        functools.partial(_encoder_layer_kernel, norm_first=norm_first),
        out_shape=jax.ShapeDtypeStruct((N, H), jnp.float32),
        grid=(1,),                                           # single fused step
        in_specs=[
            pl.BlockSpec((N, H), lambda i: (0, 0)),          # tokens
            pl.BlockSpec((1, N, N), lambda i: (0, 0, 0)),    # additive mask bias
            pl.BlockSpec(wslab.shape, lambda i: (0, 0)),     # packed matrices
            pl.BlockSpec(vslab.shape, lambda i: (0, 0)),     # packed vectors
        ],
        out_specs=pl.BlockSpec((N, H), lambda i: (0, 0)),
        compiler_params=pltpu.CompilerParams(
            dimension_semantics=("arbitrary",)),
    )(x2d, mask_bias, wslab, vslab)
    return out2d.reshape(B, S, H)


# ----------------------------------------------------------------------------
# Parameters (weights stored (in, out); y = x @ W + b)
# ----------------------------------------------------------------------------
def init_raw_params(key):
    H, P = HID_DIM, PF_DIM
    ks = jax.random.split(key, 16)

    def w(k, shape):
        return jax.random.normal(k, shape, jnp.float32) * 0.02

    return {
        "wq": w(ks[0], (H, H)),  "bq": w(ks[1], (H,)),
        "wk": w(ks[2], (H, H)),  "bk": w(ks[3], (H,)),
        "wv": w(ks[4], (H, H)),  "bv": w(ks[5], (H,)),
        "wo": w(ks[6], (H, H)),  "bo": w(ks[7], (H,)),
        "w1": w(ks[8], (H, P)),  "b1": w(ks[9], (P,)),
        "w2": w(ks[10], (P, H)), "b2": w(ks[11], (H,)),
        "ln1_g": 1.0 + w(ks[12], (H,)), "ln1_b": w(ks[13], (H,)),
        "ln2_g": 1.0 + w(ks[14], (H,)), "ln2_b": w(ks[15], (H,)),
    }


def pack_layer_params(rp):
    """Offline packing: fused/transposed QKV with 1/sqrt(hd) folded into Q,
    all matrices + QKV bias column in one (320, 64) slab, all row-vectors
    (lane-0 aligned) in one (8, 64) slab."""
    H, P = HID_DIM, PF_DIM
    inv_scale = 1.0 / (float(HEAD_DIM) ** 0.5)

    wq = rp["wq"] * inv_scale
    bq = rp["bq"] * inv_scale
    wqkv_t = jnp.concatenate([wq, rp["wk"], rp["wv"]], axis=1).T     # (3H, H)
    bqkv = jnp.concatenate([bq, rp["bk"], rp["bv"]])                 # (3H,)

    LW = max(H, P)                     # 64 lanes
    wslab = jnp.zeros((8 * H + P, LW), jnp.float32)                  # (320, 64)
    wslab = wslab.at[0:3 * H, 0:H].set(wqkv_t)
    wslab = wslab.at[3 * H:4 * H, 0:H].set(rp["wo"])
    wslab = wslab.at[4 * H:5 * H, 0:P].set(rp["w1"])
    wslab = wslab.at[5 * H:5 * H + P, 0:H].set(rp["w2"])
    wslab = wslab.at[5 * H + P:8 * H + P, 0].set(bqkv)               # bias column

    vslab = jnp.zeros((8, LW), jnp.float32)                          # (8, 64)
    vslab = vslab.at[0, 0:H].set(rp["bo"])
    vslab = vslab.at[1, 0:H].set(rp["ln1_g"])
    vslab = vslab.at[2, 0:H].set(rp["ln1_b"])
    vslab = vslab.at[3, 0:P].set(rp["b1"])
    vslab = vslab.at[4, 0:H].set(rp["b2"])
    vslab = vslab.at[5, 0:H].set(rp["ln2_g"])
    vslab = vslab.at[6, 0:H].set(rp["ln2_b"])

    return {"wslab": wslab, "vslab": vslab}


# ----------------------------------------------------------------------------
# Pure-JAX reference (mirrors the PyTorch module exactly)
# ----------------------------------------------------------------------------
def encoder_layer_reference(src, src_mask, rp, norm_first=False):
    B, S, H = src.shape

    def ln(x, g, b):
        mu = jnp.mean(x, -1, keepdims=True)
        var = jnp.mean((x - mu) ** 2, -1, keepdims=True)
        return (x - mu) * jax.lax.rsqrt(var + LN_EPS) * g + b

    def mha(x):
        q = x @ rp["wq"] + rp["bq"]
        k = x @ rp["wk"] + rp["bk"]
        v = x @ rp["wv"] + rp["bv"]

        def split(t):
            return t.reshape(B, S, N_HEADS, HEAD_DIM).transpose(0, 2, 1, 3)

        q, k, v = split(q), split(k), split(v)
        e = jnp.einsum("bhqd,bhkd->bhqk", q, k) / jnp.sqrt(jnp.float32(HEAD_DIM))
        e = jnp.where(src_mask.reshape(B, 1, 1, S) == 0, MASK_FILL, e)
        a = jax.nn.softmax(e, axis=-1)
        ctx = jnp.einsum("bhqk,bhkd->bhqd", a, v)
        ctx = ctx.transpose(0, 2, 1, 3).reshape(B, S, H)
        return ctx @ rp["wo"] + rp["bo"]

    def ffn(x):
        h = jax.nn.relu(x @ rp["w1"] + rp["b1"])
        return h @ rp["w2"] + rp["b2"]

    if norm_first:
        src = src + mha(ln(src, rp["ln1_g"], rp["ln1_b"]))
        src = src + ffn(ln(src, rp["ln2_g"], rp["ln2_b"]))
    else:
        src = ln(src + mha(src), rp["ln1_g"], rp["ln1_b"])
        src = ln(src + ffn(src), rp["ln2_g"], rp["ln2_b"])
    return src


if __name__ == "__main__":
    B, S = 2, 8
    key = jax.random.PRNGKey(0)
    kp, kx = jax.random.split(key)

    raw = init_raw_params(kp)
    packed = pack_layer_params(raw)

    src = jax.random.normal(kx, (B, S, HID_DIM), jnp.float32)
    # mask: batch 0 fully valid, batch 1 has last two key positions padded.
    src_mask = jnp.ones((B, 1, 1, S), dtype=jnp.int32)
    src_mask = src_mask.at[1, 0, 0, -2:].set(0)

    for norm_first in (False, True):
        out = encoder_layer(src, src_mask, packed, norm_first=norm_first)
        jax.block_until_ready(out)
        assert out.shape == (B, S, HID_DIM)
        assert bool(jnp.all(jnp.isfinite(out)))
        ref = encoder_layer_reference(src, src_mask, raw, norm_first=norm_first)
        err = float(jnp.max(jnp.abs(out - ref)))
        assert err < 5e-3, f"norm_first={norm_first} max_abs_err={err}"

    print("KERNEL_OK")
</pallas_src>

<mosaic_0001>
module attributes {stable_mosaic.version = 11 : i64} {
  func.func @_encoder_layer_kernel(%arg0: i32, %arg1: memref<16x32xf32, #tpu.memory_space<vmem>>, %arg2: memref<1x16x16xf32, #tpu.memory_space<vmem>>, %arg3: memref<320x64xf32, #tpu.memory_space<vmem>>, %arg4: memref<8x64xf32, #tpu.memory_space<vmem>>, %arg5: memref<16x32xf32, #tpu.memory_space<vmem>>) attributes {dimension_semantics = [#tpu.dimension_semantics<arbitrary>], iteration_bounds = array<i64: 1>, scalar_prefetch = 0 : i64, scratch_operands = 0 : i64, tpu.core_type = #tpu.core_type<tc>, window_params = [{pipeline_mode = #tpu.pipeline_mode<synchronous>, transform_indices = @transform_0, window_bounds = array<i64: 16, 32>}, {pipeline_mode = #tpu.pipeline_mode<synchronous>, transform_indices = @transform_1, window_bounds = array<i64: 1, 16, 16>}, {pipeline_mode = #tpu.pipeline_mode<synchronous>, transform_indices = @transform_2, window_bounds = array<i64: 320, 64>}, {pipeline_mode = #tpu.pipeline_mode<synchronous>, transform_indices = @transform_3, window_bounds = array<i64: 8, 64>}, {pipeline_mode = #tpu.pipeline_mode<synchronous>, transform_indices = @transform_4, window_bounds = array<i64: 16, 32>}]} {
    %c0 = arith.constant 0 : index
    %c0_0 = arith.constant 0 : index
    %0 = vector.load %arg1[%c0, %c0_0] : memref<16x32xf32, #tpu.memory_space<vmem>>, vector<16x32xf32>
    %c0_1 = arith.constant 0 : index
    %c0_2 = arith.constant 0 : index
    %c0_3 = arith.constant 0 : index
    %1 = vector.load %arg2[%c0_1, %c0_2, %c0_3] : memref<1x16x16xf32, #tpu.memory_space<vmem>>, vector<1x16x16xf32>
    %c0_4 = arith.constant 0 : index
    %c0_5 = arith.constant 0 : index
    %2 = vector.load %arg3[%c0_4, %c0_5] : memref<320x64xf32, #tpu.memory_space<vmem>>, vector<96x32xf32>
    %c96 = arith.constant 96 : index
    %c0_6 = arith.constant 0 : index
    %3 = vector.load %arg3[%c96, %c0_6] : memref<320x64xf32, #tpu.memory_space<vmem>>, vector<32x32xf32>
    %c128 = arith.constant 128 : index
    %c0_7 = arith.constant 0 : index
    %4 = vector.load %arg3[%c128, %c0_7] : memref<320x64xf32, #tpu.memory_space<vmem>>, vector<32x64xf32>
    %c160 = arith.constant 160 : index
    %c0_8 = arith.constant 0 : index
    %5 = vector.load %arg3[%c160, %c0_8] : memref<320x64xf32, #tpu.memory_space<vmem>>, vector<64x32xf32>
    %c224 = arith.constant 224 : index
    %c0_9 = arith.constant 0 : index
    %6 = vector.load %arg3[%c224, %c0_9] : memref<320x64xf32, #tpu.memory_space<vmem>>, vector<96x1xf32>
    %c0_10 = arith.constant 0 : index
    %c0_11 = arith.constant 0 : index
    %7 = vector.load %arg4[%c0_10, %c0_11] : memref<8x64xf32, #tpu.memory_space<vmem>>, vector<1x32xf32>
    %c1 = arith.constant 1 : index
    %c0_12 = arith.constant 0 : index
    %8 = vector.load %arg4[%c1, %c0_12] : memref<8x64xf32, #tpu.memory_space<vmem>>, vector<1x32xf32>
    %c2 = arith.constant 2 : index
    %c0_13 = arith.constant 0 : index
    %9 = vector.load %arg4[%c2, %c0_13] : memref<8x64xf32, #tpu.memory_space<vmem>>, vector<1x32xf32>
    %c3 = arith.constant 3 : index
    %c0_14 = arith.constant 0 : index
    %10 = vector.load %arg4[%c3, %c0_14] : memref<8x64xf32, #tpu.memory_space<vmem>>, vector<1x64xf32>
    %c4 = arith.constant 4 : index
    %c0_15 = arith.constant 0 : index
    %11 = vector.load %arg4[%c4, %c0_15] : memref<8x64xf32, #tpu.memory_space<vmem>>, vector<1x32xf32>
    %c5 = arith.constant 5 : index
    %c0_16 = arith.constant 0 : index
    %12 = vector.load %arg4[%c5, %c0_16] : memref<8x64xf32, #tpu.memory_space<vmem>>, vector<1x32xf32>
    %c6 = arith.constant 6 : index
    %c0_17 = arith.constant 0 : index
    %13 = vector.load %arg4[%c6, %c0_17] : memref<8x64xf32, #tpu.memory_space<vmem>>, vector<1x32xf32>
    "tpu.trace_start"() <{level = 10 : i32, message = "oh,nh->on"}> : () -> ()
    %cst = arith.constant dense<0.000000e+00> : vector<96x16xf32>
    %14 = tpu.matmul %2, %0, %cst {dimension_numbers = #tpu.dot_dimension_numbers<[1], [1], [0], [0], [0, 0, 1, 0], [], []>} : vector<96x32xf32>, vector<16x32xf32>, vector<96x16xf32> -> vector<96x16xf32>
    "tpu.trace_stop"() : () -> ()
    %15 = vector.broadcast %6 : vector<96x1xf32> to vector<96x16xf32>
    %16 = arith.addf %14, %15 : vector<96x16xf32>
    %17 = vector.shape_cast %16 : vector<96x16xf32> to vector<12x8x16xf32>
    %18 = vector.extract_strided_slice %17 {offsets = [0, 0, 0], sizes = [4, 8, 16], strides = [1, 1, 1]} : vector<12x8x16xf32> to vector<4x8x16xf32>
    %19 = tpu.transpose %18, [0, 2, 1] : vector<4x8x16xf32> -> vector<4x16x8xf32>
    %20 = vector.extract_strided_slice %17 {offsets = [4, 0, 0], sizes = [4, 8, 16], strides = [1, 1, 1]} : vector<12x8x16xf32> to vector<4x8x16xf32>
    %21 = vector.extract_strided_slice %17 {offsets = [8, 0, 0], sizes = [4, 8, 16], strides = [1, 1, 1]} : vector<12x8x16xf32> to vector<4x8x16xf32>
    "tpu.trace_start"() <{level = 10 : i32, message = "hqd,hdk->hqk"}> : () -> ()
    %cst_18 = arith.constant dense<0.000000e+00> : vector<4x16x16xf32>
    %22 = tpu.matmul %19, %20, %cst_18 {dimension_numbers = #tpu.dot_dimension_numbers<[2], [1], [1], [2], [0, 0, 0, 1, 1, 2], [0], [0]>} : vector<4x16x8xf32>, vector<4x8x16xf32>, vector<4x16x16xf32> -> vector<4x16x16xf32>
    "tpu.trace_stop"() : () -> ()
    %23 = vector.broadcast %1 : vector<1x16x16xf32> to vector<4x16x16xf32>
    %24 = arith.addf %22, %23 : vector<4x16x16xf32>
    %cst_19 = arith.constant dense<0xFF800000> : vector<4x16xf32>
    %25 = vector.multi_reduction <maximumf>, %24, %cst_19 [2] : vector<4x16x16xf32> to vector<4x16xf32>
    %26 = vector.shape_cast %25 : vector<4x16xf32> to vector<4x16x1xf32>
    %27 = vector.broadcast %26 : vector<4x16x1xf32> to vector<4x16x16xf32>
    %28 = arith.subf %24, %27 : vector<4x16x16xf32>
    %29 = math.exp %28 : vector<4x16x16xf32>
    %cst_20 = arith.constant dense<0.000000e+00> : vector<4x16xf32>
    %30 = vector.multi_reduction <add>, %29, %cst_20 [2] : vector<4x16x16xf32> to vector<4x16xf32>
    %31 = vector.shape_cast %30 : vector<4x16xf32> to vector<4x16x1xf32>
    %32 = tpu.reciprocal %31 {approx = true} : vector<4x16x1xf32> -> vector<4x16x1xf32>
    %33 = vector.broadcast %32 : vector<4x16x1xf32> to vector<4x16x16xf32>
    %34 = arith.mulf %29, %33 : vector<4x16x16xf32>
    "tpu.trace_start"() <{level = 10 : i32, message = "hdk,hqk->hdq"}> : () -> ()
    %cst_21 = arith.constant dense<0.000000e+00> : vector<4x8x16xf32>
    %35 = tpu.matmul %21, %34, %cst_21 {dimension_numbers = #tpu.dot_dimension_numbers<[2], [2], [1], [1], [0, 0, 0, 1, 1, 1], [0], [0]>} : vector<4x8x16xf32>, vector<4x16x16xf32>, vector<4x8x16xf32> -> vector<4x8x16xf32>
    "tpu.trace_stop"() : () -> ()
    %36 = vector.shape_cast %35 : vector<4x8x16xf32> to vector<32x16xf32>
    %37 = tpu.transpose %36, [1, 0] : vector<32x16xf32> -> vector<16x32xf32>
    %cst_22 = arith.constant dense<0.000000e+00> : vector<16x32xf32>
    %38 = tpu.matmul %37, %3, %cst_22 {dimension_numbers = #tpu.dot_dimension_numbers<[1], [0], [0], [1], [0, 0, 1, 1], [], []>} : vector<16x32xf32>, vector<32x32xf32>, vector<16x32xf32> -> vector<16x32xf32>
    %39 = vector.broadcast %7 : vector<1x32xf32> to vector<16x32xf32>
    %40 = arith.addf %38, %39 : vector<16x32xf32>
    %41 = arith.addf %0, %40 : vector<16x32xf32>
    %cst_23 = arith.constant dense<0.000000e+00> : vector<16xf32>
    %42 = vector.multi_reduction <add>, %41, %cst_23 [1] : vector<16x32xf32> to vector<16xf32>
    %43 = vector.shape_cast %42 : vector<16xf32> to vector<16x1xf32>
    %cst_24 = arith.constant 3.200000e+01 : f32
    %44 = vector.broadcast %cst_24 : f32 to vector<16x1xf32>
    %45 = arith.divf %43, %44 : vector<16x1xf32>
    %46 = vector.broadcast %45 : vector<16x1xf32> to vector<16x32xf32>
    %47 = arith.subf %41, %46 : vector<16x32xf32>
    %48 = arith.mulf %47, %47 : vector<16x32xf32>
    %cst_25 = arith.constant dense<0.000000e+00> : vector<16xf32>
    %49 = vector.multi_reduction <add>, %48, %cst_25 [1] : vector<16x32xf32> to vector<16xf32>
    %50 = vector.shape_cast %49 : vector<16xf32> to vector<16x1xf32>
    %cst_26 = arith.constant 3.200000e+01 : f32
    %51 = vector.broadcast %cst_26 : f32 to vector<16x1xf32>
    %52 = arith.divf %50, %51 : vector<16x1xf32>
    %53 = vector.broadcast %45 : vector<16x1xf32> to vector<16x32xf32>
    %54 = arith.subf %41, %53 : vector<16x32xf32>
    %cst_27 = arith.constant 9.99999974E-6 : f32
    %55 = vector.broadcast %cst_27 : f32 to vector<16x1xf32>
    %56 = arith.addf %52, %55 : vector<16x1xf32>
    %57 = math.rsqrt %56 : vector<16x1xf32>
    %58 = vector.broadcast %57 : vector<16x1xf32> to vector<16x32xf32>
    %59 = arith.mulf %54, %58 : vector<16x32xf32>
    %60 = vector.broadcast %8 : vector<1x32xf32> to vector<16x32xf32>
    %61 = arith.mulf %59, %60 : vector<16x32xf32>
    %62 = vector.broadcast %9 : vector<1x32xf32> to vector<16x32xf32>
    %63 = arith.addf %61, %62 : vector<16x32xf32>
    %cst_28 = arith.constant dense<0.000000e+00> : vector<16x64xf32>
    %64 = tpu.matmul %63, %4, %cst_28 {dimension_numbers = #tpu.dot_dimension_numbers<[1], [0], [0], [1], [0, 0, 1, 1], [], []>} : vector<16x32xf32>, vector<32x64xf32>, vector<16x64xf32> -> vector<16x64xf32>
    %65 = vector.broadcast %10 : vector<1x64xf32> to vector<16x64xf32>
    %66 = arith.addf %64, %65 : vector<16x64xf32>
    %cst_29 = arith.constant 0.000000e+00 : f32
    %67 = vector.broadcast %cst_29 : f32 to vector<16x64xf32>
    %68 = arith.maximumf %66, %67 : vector<16x64xf32>
    %cst_30 = arith.constant dense<0.000000e+00> : vector<16x32xf32>
    %69 = tpu.matmul %68, %5, %cst_30 {dimension_numbers = #tpu.dot_dimension_numbers<[1], [0], [0], [1], [0, 0, 1, 1], [], []>} : vector<16x64xf32>, vector<64x32xf32>, vector<16x32xf32> -> vector<16x32xf32>
    %70 = vector.broadcast %11 : vector<1x32xf32> to vector<16x32xf32>
    %71 = arith.addf %69, %70 : vector<16x32xf32>
    %72 = arith.addf %63, %71 : vector<16x32xf32>
    %cst_31 = arith.constant dense<0.000000e+00> : vector<16xf32>
    %73 = vector.multi_reduction <add>, %72, %cst_31 [1] : vector<16x32xf32> to vector<16xf32>
    %74 = vector.shape_cast %73 : vector<16xf32> to vector<16x1xf32>
    %cst_32 = arith.constant 3.200000e+01 : f32
    %75 = vector.broadcast %cst_32 : f32 to vector<16x1xf32>
    %76 = arith.divf %74, %75 : vector<16x1xf32>
    %77 = vector.broadcast %76 : vector<16x1xf32> to vector<16x32xf32>
    %78 = arith.subf %72, %77 : vector<16x32xf32>
    %79 = arith.mulf %78, %78 : vector<16x32xf32>
    %cst_33 = arith.constant dense<0.000000e+00> : vector<16xf32>
    %80 = vector.multi_reduction <add>, %79, %cst_33 [1] : vector<16x32xf32> to vector<16xf32>
    %81 = vector.shape_cast %80 : vector<16xf32> to vector<16x1xf32>
    %cst_34 = arith.constant 3.200000e+01 : f32
    %82 = vector.broadcast %cst_34 : f32 to vector<16x1xf32>
    %83 = arith.divf %81, %82 : vector<16x1xf32>
    %84 = vector.broadcast %76 : vector<16x1xf32> to vector<16x32xf32>
    %85 = arith.subf %72, %84 : vector<16x32xf32>
    %cst_35 = arith.constant 9.99999974E-6 : f32
    %86 = vector.broadcast %cst_35 : f32 to vector<16x1xf32>
    %87 = arith.addf %83, %86 : vector<16x1xf32>
    %88 = math.rsqrt %87 : vector<16x1xf32>
    %89 = vector.broadcast %88 : vector<16x1xf32> to vector<16x32xf32>
    %90 = arith.mulf %85, %89 : vector<16x32xf32>
    %91 = vector.broadcast %12 : vector<1x32xf32> to vector<16x32xf32>
    %92 = arith.mulf %90, %91 : vector<16x32xf32>
    %93 = vector.broadcast %13 : vector<1x32xf32> to vector<16x32xf32>
    %94 = arith.addf %92, %93 : vector<16x32xf32>
    %c0_36 = arith.constant 0 : index
    %c0_37 = arith.constant 0 : index
    %95 = vector.load %arg5[%c0_36, %c0_37] : memref<16x32xf32, #tpu.memory_space<vmem>>, vector<16x32xf32>
    tpu.vector_store %arg5[%c0_36, %c0_37], %94 {strides = array<i32>} : memref<16x32xf32, #tpu.memory_space<vmem>>, vector<16x32xf32>,
    return
  }
  func.func @transform_0(%arg0: i32) -> (i32, i32) {
    %c0_i32 = arith.constant 0 : i32
    %c0_i32_0 = arith.constant 0 : i32
    %c0_i32_1 = arith.constant 0 : i32
    return %c0_i32, %c0_i32_0 : i32, i32
  }
  func.func @transform_1(%arg0: i32) -> (i32, i32, i32) {
    %c0_i32 = arith.constant 0 : i32
    %c0_i32_0 = arith.constant 0 : i32
    %c0_i32_1 = arith.constant 0 : i32
    %c0_i32_2 = arith.constant 0 : i32
    return %c0_i32, %c0_i32_0, %c0_i32_1 : i32, i32, i32
  }
  func.func @transform_2(%arg0: i32) -> (i32, i32) {
    %c0_i32 = arith.constant 0 : i32
    %c0_i32_0 = arith.constant 0 : i32
    %c0_i32_1 = arith.constant 0 : i32
    return %c0_i32, %c0_i32_0 : i32, i32
  }
  func.func @transform_3(%arg0: i32) -> (i32, i32) {
    %c0_i32 = arith.constant 0 : i32
    %c0_i32_0 = arith.constant 0 : i32
    %c0_i32_1 = arith.constant 0 : i32
    return %c0_i32, %c0_i32_0 : i32, i32
  }
  func.func @transform_4(%arg0: i32) -> (i32, i32) {
    %c0_i32 = arith.constant 0 : i32
    %c0_i32_0 = arith.constant 0 : i32
    %c0_i32_1 = arith.constant 0 : i32
    return %c0_i32, %c0_i32_0 : i32, i32
  }
}

</mosaic_0001>

<bundles_post_ra>
// kernel: tpu_custom_call.1
= control target key start
LH: loop header
LB: loop body
LE: loop exit
PB: predicated region body
PF: predicated region fallthrough
CT: control target
= control target key end

     0   :  { %vm129_vm0 = vcmask 261120   ;;  %v1059_v2 = vmov 0   ;;  %s1363_s0 = inlined_call_operand.vmem [shape: f32[16,32], index: 0, kind: input, shape index: {}]   ;;  %s1364_s1 = inlined_call_operand.vmem [shape: f32[1,16,16], index: 1, kind: input, shape index: {}]   ;;  %s1365_s2 = inlined_call_operand.vmem [shape: f32[320,64], index: 2, kind: input, shape index: {}]   ;;  %s1366_s3 = inlined_call_operand.vmem [shape: f32[8,64], index: 3, kind: input, shape index: {}]   ;;  %s1367_s4 = inlined_call_operand.hbm [shape: f32[16,32], index: 4, kind: output, shape index: {}]  }
   0x1   :  { %v1092_v0 = vld [vmem:[%s1363_s0 + $0x8] sm:$0xff]  ;;  %v50_v1 = vld [vmem:[%s1365_s2 + $0xe0] sm:$0xff]  ;;  %981 = vset.pattern.permute.xlu0 %v1059_v2  ;;  %982 = vset.pattern.permute.xlu1 %v1059_v2  ;;  %v52_v4 = vld [vmem:[%s1365_s2 + $0xf0] sm:$0xff] }
   0x2   :  { %931 = vmatpush.xpose.msk.msra.mxu0 %vm129_vm0, %v1092_v0  ;;  %71 = vperm.xlu0 %981, %v50_v1   ;;  %v1102_v3 = vld [vmem:[%s1363_s0] sm:$0xff] }
   0x3   :  { %81 = vperm.xlu1 %982, %v52_v4   ;;  %983 = vset.pattern.permute.xlu2 %v1059_v2  ;;  %v22_v5 = vld [vmem:[%s1365_s2] sm:$0xff] }
   0x4   :  { %971 = vmatpush.xpose.msk.msra.mxu1 %vm129_vm0, %v1092_v0  ;;  %972 = vmatpush.xpose.msk.msra.mxu2 %vm129_vm0, %v1092_v0 }
   0x6   :  { %932 = vmatpush.xpose.msk.msra.mxu0 %vm129_vm0, %v1102_v3 }
   0x7   :  { %9 = vsyncpa [#allocation3], 0  ;;  %v51_v6 = vld [vmem:[%s1365_s2 + $0xe8] sm:$0xff]  ;;  %v54_v7 = vld [vmem:[%s1365_s2 + $0x100] sm:$0xff]  ;;  %vm353_vm1 = vcmask 64512   ;;  %vm470_vm2 = vcmask 130048  }
   0x8   :  { %973 = vmatpush.xpose.msk.msra.mxu1 %vm129_vm0, %v1102_v3  ;;  %974 = vmatpush.xpose.msk.msra.mxu2 %vm129_vm0, %v1102_v3  ;;  %v23_v8 = vld [vmem:[%s1365_s2 + $0x8] sm:$0xff]  ;;  %v56_v9 = vld [vmem:[%s1365_s2 + $0x110] sm:$0xff]  ;;  %v57_v10 = vld [vmem:[%s1365_s2 + $0x118] sm:$0xff]  ;;  %vm829_vm10 = vcmask 523264   ;;  %s1061_s6 = smov [#allocation2]   ;;  %s919_s9 = sshll.u32 %s1367_s4, 4  ;;  %s920_s9 = int_to_ptr.hbm [resolvable:$true] %s919_s9 }
   0x9   :  { %933 = vmatmul.msk.f32.vlgmr.msra.gmra.mxu0 %vm129_vm0, %v22_v5  ;;  %v24_v11 = vld [vmem:[%s1365_s2 + $0x10] sm:$0xff]  ;;  %v25_v12 = vld [vmem:[%s1365_s2 + $0x18] sm:$0xff]  ;;  %v26_v14 = vld [vmem:[%s1365_s2 + $0x20] sm:$0xff]  ;;  %s917_s7 = sshll.u32 %s1061_s6, 4  ;;  %s1063_s10 = smov 8   ;;  %s918_s7 = int_to_ptr.vmem [resolvable:$true] %s917_s7 }
   0xa   :  { %76 = vperm.xlu0 %981, %v51_v6   ;;  %v53_v13 = vld [vmem:[%s1365_s2 + $0xf8] sm:$0xff]  ;;  %v55_v15 = vld [vmem:[%s1365_s2 + $0x108] sm:$0xff]  ;;  %v28_v17 = vld [vmem:[%s1365_s2 + $0x30] sm:$0xff] }
   0xb   :  { %91 = vperm.xlu1 %982, %v54_v7   ;;  %86 = vperm.xlu2 %983, %v53_v13   ;;  %v27_v16 = vld [vmem:[%s1365_s2 + $0x28] sm:$0xff]  ;;  %v29_v18 = vld [vmem:[%s1365_s2 + $0x38] sm:$0xff]  ;;  %v30_v31 = vld [vmem:[%s1365_s2 + $0x40] sm:$0xff] }
   0xc   :  { %941 = vmatmul.msk.f32.vlgmr.msra.gmra.mxu1 %vm129_vm0, %v30_v31  ;;  %v31_v32 = vld [vmem:[%s1365_s2 + $0x48] sm:$0xff]  ;;  %v32_v45 = vld [vmem:[%s1365_s2 + $0x50] sm:$0xff]  ;;  %v33_v46 = vld [vmem:[%s1365_s2 + $0x58] sm:$0xff] }
   0xd   :  { %943 = vmatmul.msk.f32.vlgmr.msra.gmra.mxu2 %vm129_vm0, %v32_v45  ;;  %v20_v57 = vld [vmem:[%s1364_s1] sm:$0xff]  ;;  %v21_v62 = vld [vmem:[%s1364_s1 + $0x8] sm:$0xff] }
  0x11   :  { %934 = vmatmul.msk.f32.gmra.mxu0 %vm129_vm0, %v23_v8 }
  0x12   :  { %101 = vperm.xlu0 %981, %v56_v9  }
  0x13   :  { %106 = vperm.xlu1 %982, %v57_v10   ;;  %96 = vperm.xlu2 %983, %v55_v15  }
  0x14   :  { %942 = vmatmul.msk.f32.gmra.mxu1 %vm129_vm0, %v31_v32 }
  0x15   :  { %944 = vmatmul.msk.f32.gmra.mxu2 %vm129_vm0, %v33_v46 }
  0x19   :  { %935 = vmatmul.msk.f32.gmra.mxu0 %vm129_vm0, %v24_v11 }
  0x21   :  { %936 = vmatmul.msk.f32.gmra.mxu0 %vm129_vm0, %v25_v12 }
  0x29   :  { %937 = vmatmul.msk.f32.gmra.mxu0 %vm129_vm0, %v26_v14 }
  0x31   :  { %938 = vmatmul.msk.f32.gmra.mxu0 %vm129_vm0, %v27_v16 }
  0x39   :  { %939 = vmatmul.msk.f32.gmra.mxu0 %vm129_vm0, %v28_v17 }
  0x41   :  { %940 = vmatmul.msk.f32.gmra.mxu0 %vm129_vm0, %v29_v18 }
  0x65   :  { %v87_v28 = vpop.permute.xlu2 %86 }
  0x6d   :  { %v97_v36 = vpop.permute.xlu2 %96 }
  0x74   :  { %v72_v19 = vpop.permute.xlu0 %71 }
  0x75   :  { %v82_v25 = vpop.permute.xlu1 %81 }
  0x7c   :  { %v77_v22 = vpop.permute.xlu0 %76 }
  0x7d   :  { %v92_v33 = vpop.permute.xlu1 %91 }
  0x84   :  { %v102_v39 = vpop.permute.xlu0 %101 }
  0x85   :  { %v107_v42 = vpop.permute.xlu1 %106 }
  0x86   :  { %v189_v20 = vpop.f32.mrf.mxu0 }
  0x87   :  { %v190_v21 = vadd.f32 %v189_v20, %v72_v19 }
  0x89   :  { %225 = vxpose.xlu2.b32.start.end [1/1] (short) (narrow) %v190_v21, 16  ;;  %v1191_v55 = vpop.f32.mrf.mxu1 }
  0x8e   :  { %v192_v23 = vpop.f32.mrf.mxu0 }
  0x8f   :  { %v193_v24 = vadd.f32 %v192_v23, %v77_v22  ;;  %v58_v23 = vld [vmem:[%s1365_s2 + $0x120] sm:$0xff] }
  0x90   :  { %v1199_v61 = vpop.f32.mrf.mxu2 }
  0x91   :  { %257 = vxpose.xlu0.b32.start.end [1/1] (short) (narrow) %v193_v24, 16  ;;  %v1193_v56 = vpop.f32.mrf.mxu1 }
  0x96   :  { %v195_v26 = vpop.f32.mrf.mxu0 }
  0x97   :  { %v196_v27 = vadd.f32 %v195_v26, %v82_v25 }
  0x98   :  { %v1205_v4 = vpop.f32.mrf.mxu2 }
  0x99   :  { %289 = vxpose.xlu1.b32.start.end [1/1] (short) (narrow) %v196_v27, 16 }
  0x9e   :  { %v198_v29 = vpop.f32.mrf.mxu0 }
  0x9f   :  { %v199_v30 = vadd.f32 %v198_v29, %v87_v28 }
  0xa1   :  { %321 = vxpose.xlu2.b32.start.end [1/1] (short) (narrow) %v199_v30, 16 }
  0xa6   :  { %v201_v34 = vpop.f32.mrf.mxu0 }
  0xa7   :  { %v202_v35 = vadd.f32 %v201_v34, %v92_v33 }
  0xa9   :  { %375 = vmatpush.msrb.mxu1 %v202_v35 }
  0xae   :  { %v204_v37 = vpop.f32.mrf.mxu0 }
  0xaf   :  { %v205_v38 = vadd.f32 %v204_v37, %v97_v36 }
  0xb1   :  { %404 = vmatpush.msrb.mxu2 %v205_v38 }
  0xb6   :  { %v207_v40 = vpop.f32.mrf.mxu0 }
  0xb7   :  { %v208_v41 = vadd.f32 %v207_v40, %v102_v39 }
  0xb9   :  { %433 = vmatpush.msra.mxu3 %v208_v41 }
  0xbe   :  { %v210_v43 = vpop.f32.mrf.mxu0 }
  0xbf   :  { %v211_v44 = vadd.f32 %v210_v43, %v107_v42 }
  0xc1   :  { %462 = vmatpush.msra.mxu1 %v211_v44 }
 0x122   :  { %v241_v47 = vpop.trf.xlu2 }
 0x123   :  { %945 = vmatmul.msk.f32.vlgmr.msrb.gmra.mxu1 %vm353_vm1, %v241_v47 }
 0x12a   :  { %v242_v48 = vpop.trf.xlu2 }
 0x12b   :  { %946 = vmatmul.msk.f32.gmra.mxu1 %vm353_vm1, %v242_v48 }
 0x135   :  { %v273_v49 = vpop.trf.xlu0 }
 0x136   :  { %947 = vmatmul.msk.f32.vlgmr.msrb.gmra.mxu2 %vm353_vm1, %v273_v49 }
 0x13a   :  { %v337_v50 = vpop.trf.xlu2 }
 0x13b   :  { %951 = vmatmul.msk.f32.vlgmr.msra.gmra.mxu1 %vm353_vm1, %v337_v50 }
 0x13d   :  { %v305_v51 = vpop.trf.xlu1  ;;  %v274_v52 = vpop.trf.xlu0 }
 0x13e   :  { %948 = vmatmul.msk.f32.gmra.mxu2 %vm353_vm1, %v274_v52  ;;  %949 = vmatmul.msk.f32.vlgmr.msra.gmra.mxu3 %vm353_vm1, %v305_v51 }
 0x142   :  { %v338_v53 = vpop.trf.xlu2 }
 0x143   :  { %952 = vmatmul.msk.f32.gmra.mxu1 %vm353_vm1, %v338_v53 }
 0x145   :  { %v306_v54 = vpop.trf.xlu1 }
 0x146   :  { %950 = vmatmul.msk.f32.gmra.mxu3 %vm353_vm1, %v306_v54 }
 0x1a0   :  { %v377_v58 = vpop.f32.mrf.mxu1 }
 0x1a1   :  { %v378_v59 = vadd.f32 %v377_v58, %v20_v57 }
 0x1a3   :  { %v471_v60 = vsel %vm470_vm2, %v378_v59, -inf }
 0x1a4   :  { %472 = vmax.xlane.f32.xlu1 %v471_v60 }
 0x1a8   :  { %v380_v63 = vpop.f32.mrf.mxu1 }
 0x1a9   :  { %v381_v1 = vadd.f32 %v380_v63, %v21_v62 }
 0x1ab   :  { %v474_v2 = vsel %vm470_vm2, %v381_v1, -inf }
 0x1ac   :  { %475 = vmax.xlane.f32.xlu0 %v474_v2 }
 0x1b8   :  { %v464_v5 = vpop.f32.mrf.mxu1 }
 0x1b9   :  { %v406_v6 = vpop.f32.mrf.mxu2  ;;  %v465_v18 = vadd.f32 %v464_v5, %v20_v57 }
 0x1ba   :  { %v407_v7 = vadd.f32 %v406_v6, %v20_v57  ;;  %v59_v6 = vld [vmem:[%s1365_s2 + $0x128] sm:$0xff] }
 0x1bb   :  { %v489_v21 = vsel %vm470_vm2, %v465_v18, -inf }
 0x1bc   :  { %v477_v8 = vsel %vm470_vm2, %v407_v7, -inf }
 0x1bd   :  { %478 = vmax.xlane.f32.xlu0 %v477_v8  ;;  %v60_v8 = vld [vmem:[%s1365_s2 + $0x130] sm:$0xff] }
 0x1c0   :  { %v467_v9 = vpop.f32.mrf.mxu1 }
 0x1c1   :  { %v409_v10 = vpop.f32.mrf.mxu2  ;;  %v435_v11 = vpop.f32.mrf.mxu3  ;;  %v1208_v12 = vadd.f32 %v467_v9, %v21_v62 }
 0x1c2   :  { %v410_v13 = vadd.f32 %v409_v10, %v21_v62  ;;  %v436_v14 = vadd.f32 %v435_v11, %v20_v57 }
 0x1c3   :  { %v492_v15 = vsel %vm470_vm2, %v1208_v12, -inf }
 0x1c4   :  { %v480_v16 = vsel %vm470_vm2, %v410_v13, -inf  ;;  %v483_v17 = vsel %vm470_vm2, %v436_v14, -inf }
 0x1c5   :  { %481 = vmax.xlane.f32.xlu2 %v480_v16  ;;  %484 = vmax.xlane.f32.xlu1 %v483_v17 }
 0x1c6   :  { %493 = vmax.xlane.f32.xlu0 %v492_v15 }
 0x1c9   :  { %v438_v19 = vpop.f32.mrf.mxu3 }
 0x1ca   :  { %v439_v20 = vadd.f32 %v438_v19, %v21_v62 }
 0x1cc   :  { %v486_v22 = vsel %vm470_vm2, %v439_v20, -inf }
 0x1cd   :  { %487 = vmax.xlane.f32.xlu1 %v486_v22  ;;  %490 = vmax.xlane.f32.xlu2 %v489_v21 }
 0x1e6   :  { %111 = vperm.xlu1 %982, %v58_v23  }
 0x217   :  { %v473_v24 = vpop.xlane.xlu1 %472 }
 0x218   :  { %v495_v25 = vsub.f32 %v378_v59, %v473_v24 }
 0x21a   :  { %v503_v26 = vmul.f32 1.442695, %v495_v25 }
 0x21c   :  { %991 = vpow2.f32 %v503_v26 }
 0x21f   :  { %v476_v27 = vpop.xlane.xlu0 %475 }
 0x220   :  { %v496_v28 = vsub.f32 %v381_v1, %v476_v27 }
 0x222   :  { %v1219_v29 = vpop.eup %991  ;;  %v505_v30 = vmul.f32 1.442695, %v496_v28 }
 0x223   :  { %v519_v31 = vsel %vm470_vm2, %v1219_v29, 0.0 }
 0x224   :  { %993 = vpow2.f32 %v505_v30  ;;  %520 = vadd.xlane.f32.xlu2 %v519_v31 }
 0x22a   :  { %v994_v32 = vpop.eup %993 }
 0x22b   :  { %v522_v33 = vsel %vm470_vm2, %v994_v32, 0.0 }
 0x22c   :  { %523 = vadd.xlane.f32.xlu0 %v522_v33 }
 0x230   :  { %v479_v34 = vpop.xlane.xlu0 %478 }
 0x231   :  { %v497_v35 = vsub.f32 %v407_v7, %v479_v34  ;;  %v61_v7 = vld [vmem:[%s1365_s2 + $0x138] sm:$0xff] }
 0x233   :  { %v507_v36 = vmul.f32 1.442695, %v497_v35 }
 0x235   :  { %995 = vpow2.f32 %v507_v36 }
 0x238   :  { %v485_v37 = vpop.xlane.xlu1 %484  ;;  %v482_v38 = vpop.xlane.xlu2 %481 }
 0x239   :  { %v499_v39 = vsub.f32 %v436_v14, %v485_v37  ;;  %v498_v40 = vsub.f32 %v410_v13, %v482_v38  ;;  %v494_v47 = vpop.xlane.xlu0 %493 }
 0x23a   :  { %v502_v53 = vsub.f32 %v1208_v12, %v494_v47  ;;  %v984_v47 = vld [vmem:[%s1366_s3] ss:$0 sm:$0xff] }
 0x23b   :  { %v1224_v41 = vpop.eup %995  ;;  %v511_v42 = vmul.f32 1.442695, %v499_v39  ;;  %v509_v43 = vmul.f32 1.442695, %v498_v40  ;;  %v37_v40 = vld [vmem:[%s1365_s2 + $0x78] sm:$0xff] }
 0x23c   :  { %v525_v44 = vsel %vm470_vm2, %v1224_v41, 0.0  ;;  %v517_v59 = vmul.f32 1.442695, %v502_v53  ;;  %726 = vmatpush.msrb.mxu1 %v37_v40 }
 0x23d   :  { %997 = vpow2.f32 %v511_v42  ;;  %526 = vadd.xlane.f32.xlu0 %v525_v44 }
 0x23e   :  { %999 = vpow2.f32 %v509_v43 }
 0x240   :  { %v488_v45 = vpop.xlane.xlu1 %487  ;;  %v491_v46 = vpop.xlane.xlu2 %490 }
 0x241   :  { %v500_v48 = vsub.f32 %v439_v20, %v488_v45  ;;  %v501_v49 = vsub.f32 %v465_v18, %v491_v46 }
 0x243   :  { %v1228_v50 = vpop.eup %997  ;;  %v513_v51 = vmul.f32 1.442695, %v500_v48  ;;  %v515_v52 = vmul.f32 1.442695, %v501_v49 }
 0x244   :  { %v531_v54 = vsel %vm470_vm2, %v1228_v50, 0.0  ;;  %v1000_v57 = vpop.eup %999 }
 0x245   :  { %1001 = vpow2.f32 %v513_v51  ;;  %532 = vadd.xlane.f32.xlu0 %v531_v54  ;;  %v528_v58 = vsel %vm470_vm2, %v1000_v57, 0.0 }
 0x246   :  { %1003 = vpow2.f32 %v515_v52  ;;  %529 = vadd.xlane.f32.xlu1 %v528_v58  ;;  %v1060_v58 = vmov 32.0  }
 0x247   :  { %1005 = vpow2.f32 %v517_v59 }
 0x24b   :  { %v1002_v60 = vpop.eup %1001 }
 0x24c   :  { %v1004_v62 = vpop.eup %1003  ;;  %v534_v63 = vsel %vm470_vm2, %v1002_v60, 0.0 }
 0x24d   :  { %v537_v1 = vsel %vm470_vm2, %v1004_v62, 0.0  ;;  %v1006_v2 = vpop.eup %1005 }
 0x24e   :  { %538 = vadd.xlane.f32.xlu2 %v537_v1  ;;  %535 = vadd.xlane.f32.xlu1 %v534_v63  ;;  %v540_v5 = vsel %vm470_vm2, %v1006_v2, 0.0 }
 0x256   :  { %541 = vadd.xlane.f32.xlu2 %v540_v5 }
 0x258   :  { %v112_v14 = vpop.permute.xlu1 %111 }
 0x259   :  { %116 = vperm.xlu0 %981, %v59_v6   ;;  %v214_v16 = vadd.f32 %v1191_v55, %v112_v14  ;;  %v40_v14 = vld [vmem:[%s1365_s2 + $0x90] sm:$0xff] }
 0x267   :  { %126 = vperm.xlu1 %982, %v61_v7  }
 0x26e   :  { %121 = vperm.xlu2 %983, %v60_v8  }
 0x297   :  { %v521_v9 = vpop.xlane.xlu2 %520 }
 0x29f   :  { %v524_v10 = vpop.xlane.xlu0 %523 }
 0x2a0   :  { %1007 = vrcp.f32 %v524_v10 }
 0x2a1   :  { %1009 = vrcp.f32 %v521_v9 }
 0x2a6   :  { %v1008_v11 = vpop.eup %1007 }
 0x2a7   :  { %v552_v12 = vmul.f32 %v1008_v11, %v994_v32  ;;  %v1010_v13 = vpop.eup %1009 }
 0x2a8   :  { %v551_v15 = vmul.f32 %v1010_v13, %v1219_v29  ;;  %v41_v13 = vld [vmem:[%s1365_s2 + $0x98] sm:$0xff] }
 0x2a9   :  { %953 = vmatpush.xpose.msk.msra.mxu2 %vm470_vm2, %v552_v12 }
 0x2ad   :  { %954 = vmatpush.xpose.msk.msra.mxu2 %vm470_vm2, %v551_v15  ;;  %v39_v15 = vld [vmem:[%s1365_s2 + $0x88] sm:$0xff] }
 0x2b0   :  { %955 = vmatmul.msk.f32.vlgmr.msra.gmra.mxu2 %vm470_vm2, %v214_v16  ;;  %v527_v17 = vpop.xlane.xlu0 %526  ;;  %v38_v16 = vld [vmem:[%s1365_s2 + $0x80] sm:$0xff] }
 0x2b8   :  { %v533_v21 = vpop.xlane.xlu0 %532 }
 0x2b9   :  { %v530_v18 = vpop.xlane.xlu1 %529 }
 0x2ba   :  { %1011 = vrcp.f32 %v530_v18 }
 0x2bb   :  { %1013 = vrcp.f32 %v527_v17 }
 0x2c0   :  { %v1012_v19 = vpop.eup %1011 }
 0x2c1   :  { %v539_v20 = vpop.xlane.xlu2 %538  ;;  %v536_v22 = vpop.xlane.xlu1 %535  ;;  %v554_v23 = vmul.f32 %v1012_v19, %v1000_v57 }
 0x2c2   :  { %v1014_v24 = vpop.eup %1013  ;;  %1015 = vrcp.f32 %v536_v22  ;;  %v47_v22 = vld [vmem:[%s1365_s2 + $0xc8] sm:$0xff] }
 0x2c3   :  { %956 = vmatpush.xpose.msk.msrb.mxu3 %vm470_vm2, %v554_v23  ;;  %1017 = vrcp.f32 %v533_v21  ;;  %v553_v25 = vmul.f32 %v1014_v24, %v1224_v41  ;;  %v35_v41 = vld [vmem:[%s1365_s2 + $0x68] sm:$0xff]  ;;  %v48_v21 = vld [vmem:[%s1365_s2 + $0xd0] sm:$0xff] }
 0x2c7   :  { %957 = vmatpush.xpose.msk.msrb.mxu3 %vm470_vm2, %v553_v25  ;;  %v46_v25 = vld [vmem:[%s1365_s2 + $0xc0] sm:$0xff] }
 0x2c8   :  { %v1016_v55 = vpop.eup %1015 }
 0x2c9   :  { %v542_v26 = vpop.xlane.xlu2 %541  ;;  %v556_v27 = vmul.f32 %v1016_v55, %v1002_v60  ;;  %v1018_v28 = vpop.eup %1017 }
 0x2ca   :  { %1019 = vrcp.f32 %v542_v26  ;;  %v555_v31 = vmul.f32 %v1018_v28, %v1228_v50 }
 0x2cb   :  { %v117_v29 = vpop.permute.xlu0 %116  ;;  %1021 = vrcp.f32 %v539_v20  ;;  %959 = vmatpush.xpose.msk.msrb.mxu2 %vm470_vm2, %v556_v27  ;;  %v49_v20 = vld [vmem:[%s1365_s2 + $0xd8] sm:$0xff] }
 0x2cc   :  { %v217_v30 = vadd.f32 %v1193_v56, %v117_v29  ;;  %1023 = vrcp.f32 %v1060_v58  ;;  %v45_v27 = vld [vmem:[%s1365_s2 + $0xb8] sm:$0xff]  ;;  %v988_v58 = vld [vmem:[%s1366_s3 + $0x4] ss:$0 sm:$0xff] }
 0x2ce   :  { %958 = vmatmul.msk.f32.vlgmr.msrb.gmra.mxu3 %vm470_vm2, %v217_v30 }
 0x2cf   :  { %960 = vmatpush.xpose.msk.msrb.mxu2 %vm470_vm2, %v555_v31 }
 0x2d0   :  { %v1020_v32 = vpop.eup %1019 }
 0x2d1   :  { %v558_v33 = vmul.f32 %v1020_v32, %v1006_v2  ;;  %v122_v34 = vpop.permute.xlu2 %121  ;;  %v1022_v35 = vpop.eup %1021 }
 0x2d2   :  { %v220_v36 = vadd.f32 %v1199_v61, %v122_v34  ;;  %v557_v37 = vmul.f32 %v1022_v35, %v1004_v62  ;;  %v36_v61 = vld [vmem:[%s1365_s2 + $0x70] sm:$0xff]  ;;  %v1024_v59 = vpop.eup %1023  ;;  %v985_v35 = vld [vmem:[%s1366_s3 + $0x1] ss:$0 sm:$0xff] }
 0x2d3   :  { %962 = vmatpush.xpose.msk.msra.mxu3 %vm470_vm2, %v558_v33  ;;  %727 = vmatpush.msrb.mxu1 %v36_v61  ;;  %v746_v60 = vmul.f32 32.0, %v1024_v59  ;;  %vm750_vm3 = vweird.f32 %v1024_v59 }
 0x2d4   :  { %961 = vmatmul.msk.f32.vlgmr.msrb.gmra.mxu2 %vm470_vm2, %v220_v36 }
 0x2d5   :  { %728 = vmatpush.msrb.mxu1 %v35_v41  ;;  %v747_v62 = vsub.f32 1.0, %v746_v60  ;;  %815 = vmatpush.msra.mxu2 %v41_v13 }
 0x2d7   :  { %963 = vmatpush.xpose.msk.msra.mxu3 %vm470_vm2, %v557_v37  ;;  %v748_v63 = vmul.f32 %v1024_v59, %v747_v62  ;;  %816 = vmatpush.msra.mxu2 %v40_v14 }
 0x2d9   :  { %v127_v56 = vpop.permute.xlu1 %126  ;;  %v749_v1 = vadd.f32 %v1024_v59, %v748_v63  ;;  %817 = vmatpush.msra.mxu2 %v39_v15 }
 0x2da   :  { %v223_v38 = vadd.f32 %v1205_v4, %v127_v56  ;;  %v34_v4 = vld [vmem:[%s1365_s2 + $0x60] sm:$0xff] }
 0x2db   :  { %729 = vmatpush.msrb.mxu1 %v34_v4  ;;  %v1286_v2 = vsel %vm750_vm3, %v1024_v59, %v749_v1  ;;  %818 = vmatpush.msra.mxu2 %v38_v16 }
 0x2dc   :  { %964 = vmatmul.msk.f32.vlgmr.msra.gmra.mxu3 %vm470_vm2, %v223_v38  ;;  %v986_v38 = vld [vmem:[%s1366_s3 + $0x2] ss:$0 sm:$0xff] }
 0x2dd   :  { %844 = vmatpush.msrb.mxu3 %v49_v20 }
 0x2df   :  { %845 = vmatpush.msrb.mxu3 %v48_v21 }
 0x2e1   :  { %846 = vmatpush.msrb.mxu3 %v47_v22 }
 0x2e3   :  { %847 = vmatpush.msrb.mxu3 %v46_v25 }
 0x2e5   :  { %848 = vmatpush.msrb.mxu3 %v45_v27 }
 0x333   :  { %v585_v39 = vpop.f32.mrf.mxu2 }
 0x334   :  { %675 = vxpose.xlu0.b32.start [1/4] (short) (narrow) %v585_v39, 16 }
 0x351   :  { %v614_v42 = vpop.f32.mrf.mxu3 }
 0x352   :  { %676 = vxpose.xlu0.b32.cont [2/4] (short) (narrow) %v614_v42, 16 }
 0x357   :  { %v643_v43 = vpop.f32.mrf.mxu2 }
 0x35a   :  { %677 = vxpose.xlu0.b32.cont [3/4] (short) (narrow) %v643_v43, 16 }
 0x35f   :  { %v672_v44 = vpop.f32.mrf.mxu3 }
 0x362   :  { %678 = vxpose.xlu0.b32.end [4/4] (short) (narrow) %v672_v44, 16 }
 0x3ee   :  { %v691_v45 = vpop.trf.xlu0 }
 0x3ef   :  { %965 = vmatmul.msk.f32.vlgmr.msrb.gmra.mxu1 %vm129_vm0, %v691_v45 }
 0x3f6   :  { %v692_v46 = vpop.trf.xlu0 }
 0x3f7   :  { %966 = vmatmul.msk.f32.gmra.mxu1 %vm129_vm0, %v692_v46  ;;  %v44_v46 = vld [vmem:[%s1365_s2 + $0xb0] sm:$0xff] }
 0x3f8   :  { %849 = vmatpush.msrb.mxu3 %v44_v46 }
 0x46c   :  { %v731_v48 = vpop.f32.mrf.mxu1 }
 0x46d   :  { %v732_v49 = vadd.f32 %v984_v47, %v731_v48  ;;  %v42_v48 = vld [vmem:[%s1365_s2 + $0xa0] sm:$0xff] }
 0x46f   :  { %v737_v50 = vadd.f32 %v732_v49, %v1102_v3  ;;  %v987_v49 = vld [vmem:[%s1366_s3 + $0x3] ss:$0 sm:$0xff] }
 0x471   :  { %v739_v51 = vsel %vm129_vm0, %v737_v50, 0.0 }
 0x472   :  { %740 = vadd.xlane.f32.xlu1 %v739_v51 }
 0x474   :  { %v734_v52 = vpop.f32.mrf.mxu1 }
 0x475   :  { %v735_v53 = vadd.f32 %v984_v47, %v734_v52  ;;  %v43_v47 = vld [vmem:[%s1365_s2 + $0xa8] sm:$0xff] }
 0x476   :  { %850 = vmatpush.msrb.mxu3 %v43_v47 }
 0x477   :  { %v738_v54 = vadd.f32 %v735_v53, %v1092_v0 }
 0x478   :  { %851 = vmatpush.msrb.mxu3 %v42_v48 }
 0x479   :  { %v742_v57 = vsel %vm129_vm0, %v738_v54, 0.0 }
 0x47a   :  { %743 = vadd.xlane.f32.xlu2 %v742_v57 }
 0x4e5   :  { %v741_v3 = vpop.xlane.xlu1 %740 }
 0x4e6   :  { %v752_v5 = vmul.f32 %v1286_v2, %v741_v3 }
 0x4e8   :  { %v754_v6 = vsub.f32 %v737_v50, %v752_v5 }
 0x4ea   :  { %v756_v7 = vmul.f32 %v754_v6, %v754_v6 }
 0x4ec   :  { %v758_v0 = vsel %vm129_vm0, %v756_v7, 0.0 }
 0x4ed   :  { %759 = vadd.xlane.f32.xlu1 %v758_v0  ;;  %v744_v8 = vpop.xlane.xlu2 %743 }
 0x4ee   :  { %v753_v9 = vmul.f32 %v1286_v2, %v744_v8 }
 0x4f0   :  { %v755_v10 = vsub.f32 %v738_v54, %v753_v9 }
 0x4f2   :  { %v757_v11 = vmul.f32 %v755_v10, %v755_v10 }
 0x4f4   :  { %v761_v12 = vsel %vm129_vm0, %v757_v11, 0.0 }
 0x4f5   :  { %762 = vadd.xlane.f32.xlu2 %v761_v12 }
 0x560   :  { %v760_v17 = vpop.xlane.xlu1 %759 }
 0x561   :  { %v764_v18 = vmul.f32 %v760_v17, %v1286_v2 }
 0x563   :  { %v766_v19 = vadd.f32 1e-05, %v764_v18 }
 0x565   :  { %1025 = vrsqrt.f32 %v766_v19  ;;  %vm774_vm5 = vweird.f32 %v766_v19 }
 0x568   :  { %v763_v23 = vpop.xlane.xlu2 %762 }
 0x569   :  { %v765_v24 = vmul.f32 %v763_v23, %v1286_v2 }
 0x56b   :  { %v1026_v55 = vpop.eup %1025  ;;  %v767_v26 = vadd.f32 1e-05, %v765_v24 }
 0x56c   :  { %v769_v28 = vmul.f32 %v1026_v55, %v766_v19  ;;  %vm775_vm4 = vweird.f32 %v1026_v55 }
 0x56d   :  { %1027 = vrsqrt.f32 %v767_v26  ;;  %vm776_vm6 = vmor %vm774_vm5, %vm775_vm4  ;;  %vm784_vm8 = vweird.f32 %v767_v26 }
 0x56e   :  { %v770_v29 = vmul.f32 %v1026_v55, %v769_v28 }
 0x570   :  { %v771_v30 = vmul.f32 0.5, %v770_v29  ;;  %v989_v29 = vld [vmem:[%s1366_s3 + $0x5] ss:$0 sm:$0xff] }
 0x572   :  { %v772_v31 = vsub.f32 1.5, %v771_v30 }
 0x573   :  { %v1028_v32 = vpop.eup %1027 }
 0x574   :  { %v773_v33 = vmul.f32 %v1026_v55, %v772_v31  ;;  %v779_v34 = vmul.f32 %v1028_v32, %v767_v26  ;;  %vm785_vm7 = vweird.f32 %v1028_v32 }
 0x575   :  { %vm786_vm9 = vmor %vm784_vm8, %vm785_vm7 }
 0x576   :  { %v777_v36 = vsel %vm776_vm6, %v1026_v55, %v773_v33  ;;  %v780_v37 = vmul.f32 %v1028_v32, %v779_v34 }
 0x577   :  { %v788_v56 = vmul.f32 %v777_v36, %v754_v6 }
 0x578   :  { %v781_v39 = vmul.f32 0.5, %v780_v37 }
 0x579   :  { %v791_v40 = vmul.f32 %v985_v35, %v788_v56 }
 0x57a   :  { %v782_v61 = vsub.f32 1.5, %v781_v39 }
 0x57b   :  { %v794_v41 = vadd.f32 %v986_v38, %v791_v40 }
 0x57c   :  { %v783_v4 = vmul.f32 %v1028_v32, %v782_v61 }
 0x57d   :  { %967 = vmatmul.msk.f32.vlgmr.msra.gmra.mxu2 %vm129_vm0, %v794_v41 }
 0x57e   :  { %v787_v42 = vsel %vm786_vm9, %v1028_v32, %v783_v4  ;;  %v990_v32 = vld [vmem:[%s1366_s3 + $0x6] ss:$0 sm:$0xff]  ;;  %s1062_s3 = smov 128  }
 0x57f   :  { %v789_v43 = vmul.f32 %v787_v42, %v755_v10 }
 0x581   :  { %v792_v44 = vmul.f32 %v985_v35, %v789_v43 }
 0x583   :  { %v795_v45 = vadd.f32 %v986_v38, %v792_v44 }
 0x585   :  { %968 = vmatmul.msk.f32.gmra.mxu2 %vm129_vm0, %v795_v45 }
 0x600   :  { %v820_v50 = vpop.f32.mrf.mxu2 }
 0x601   :  { %v821_v51 = vadd.f32 %v987_v49, %v820_v50 }
 0x603   :  { %v826_v52 = vmax.f32 %v821_v51, 0.0 }
 0x605   :  { %969 = vmatmul.msk.f32.vlgmr.msrb.gmra.mxu3 %vm829_vm10, %v826_v52 }
 0x608   :  { %v823_v53 = vpop.f32.mrf.mxu2 }
 0x609   :  { %v824_v54 = vadd.f32 %v987_v49, %v823_v53 }
 0x60b   :  { %v827_v57 = vmax.f32 %v824_v54, 0.0 }
 0x60d   :  { %970 = vmatmul.msk.f32.gmra.mxu3 %vm829_vm10, %v827_v57 }
 0x688   :  { %v853_v59 = vpop.f32.mrf.mxu3 }
 0x689   :  { %v854_v60 = vadd.f32 %v988_v58, %v853_v59 }
 0x68b   :  { %v859_v62 = vadd.f32 %v854_v60, %v794_v41 }
 0x68d   :  { %v861_v63 = vsel %vm129_vm0, %v859_v62, 0.0 }
 0x68e   :  { %862 = vadd.xlane.f32.xlu1 %v861_v63 }
 0x690   :  { %v856_v1 = vpop.f32.mrf.mxu3 }
 0x691   :  { %v857_v3 = vadd.f32 %v988_v58, %v856_v1 }
 0x693   :  { %v860_v5 = vadd.f32 %v857_v3, %v795_v45 }
 0x695   :  { %v864_v6 = vsel %vm129_vm0, %v860_v5, 0.0 }
 0x696   :  { %865 = vadd.xlane.f32.xlu2 %v864_v6 }
 0x701   :  { %v863_v7 = vpop.xlane.xlu1 %862 }
 0x702   :  { %v867_v0 = vmul.f32 %v863_v7, %v1286_v2 }
 0x704   :  { %v869_v8 = vsub.f32 %v859_v62, %v867_v0 }
 0x706   :  { %v871_v9 = vmul.f32 %v869_v8, %v869_v8 }
 0x708   :  { %v873_v10 = vsel %vm129_vm0, %v871_v9, 0.0 }
 0x709   :  { %874 = vadd.xlane.f32.xlu0 %v873_v10  ;;  %v866_v11 = vpop.xlane.xlu2 %865 }
 0x70a   :  { %v868_v12 = vmul.f32 %v866_v11, %v1286_v2 }
 0x70c   :  { %v870_v13 = vsub.f32 %v860_v5, %v868_v12 }
 0x70e   :  { %v872_v14 = vmul.f32 %v870_v13, %v870_v13 }
 0x710   :  { %v876_v15 = vsel %vm129_vm0, %v872_v14, 0.0 }
 0x711   :  { %877 = vadd.xlane.f32.xlu1 %v876_v15 }
 0x77c   :  { %v875_v16 = vpop.xlane.xlu0 %874 }
 0x77d   :  { %v879_v17 = vmul.f32 %v875_v16, %v1286_v2 }
 0x77f   :  { %v881_v18 = vadd.f32 1e-05, %v879_v17 }
 0x781   :  { %1029 = vrsqrt.f32 %v881_v18  ;;  %vm889_vm12 = vweird.f32 %v881_v18 }
 0x784   :  { %v878_v19 = vpop.xlane.xlu1 %877 }
 0x785   :  { %v880_v20 = vmul.f32 %v878_v19, %v1286_v2 }
 0x787   :  { %v1030_v21 = vpop.eup %1029  ;;  %v882_v22 = vadd.f32 1e-05, %v880_v20 }
 0x788   :  { %v884_v23 = vmul.f32 %v1030_v21, %v881_v18  ;;  %vm890_vm11 = vweird.f32 %v1030_v21 }
 0x789   :  { %1031 = vrsqrt.f32 %v882_v22  ;;  %vm891_vm13 = vmor %vm889_vm12, %vm890_vm11  ;;  %vm899_vm15 = vweird.f32 %v882_v22 }
 0x78a   :  { %v885_v24 = vmul.f32 %v1030_v21, %v884_v23 }
 0x78c   :  { %v886_v25 = vmul.f32 0.5, %v885_v24 }
 0x78e   :  { %v887_v55 = vsub.f32 1.5, %v886_v25 }
 0x78f   :  { %v1032_v26 = vpop.eup %1031 }
 0x790   :  { %v888_v27 = vmul.f32 %v1030_v21, %v887_v55  ;;  %v894_v28 = vmul.f32 %v1032_v26, %v882_v22  ;;  %vm900_vm14 = vweird.f32 %v1032_v26 }
 0x791   :  { %vm901_vm1 = vmor %vm899_vm15, %vm900_vm14 }
 0x792   :  { %v892_v30 = vsel %vm891_vm13, %v1030_v21, %v888_v27  ;;  %v895_v31 = vmul.f32 %v1032_v26, %v894_v28 }
 0x793   :  { %v903_v2 = vmul.f32 %v892_v30, %v869_v8 }
 0x794   :  { %v896_v33 = vmul.f32 0.5, %v895_v31 }
 0x795   :  { %v906_v34 = vmul.f32 %v989_v29, %v903_v2 }
 0x796   :  { %v897_v35 = vsub.f32 1.5, %v896_v33 }
 0x797   :  { %v909_v36 = vadd.f32 %v990_v32, %v906_v34 }
 0x798   :  { %v898_v37 = vmul.f32 %v1032_v26, %v897_v35 }
 0x799   :  { %911 = vst.msk [vmem:[#allocation2] sm:$0xff] %vm129_vm0, %v909_v36 }
 0x79a   :  { %v902_v56 = vsel %vm901_vm1, %v1032_v26, %v898_v37 }
 0x79b   :  { %v904_v38 = vmul.f32 %v902_v56, %v870_v13 }
 0x79d   :  { %v907_v39 = vmul.f32 %v989_v29, %v904_v38 }
 0x79f   :  { %v910_v40 = vadd.f32 %v990_v32, %v907_v39 }
 0x7a1   :  { %912 = vst.msk [vmem:[#allocation2 + $0x8] sm:$0xff] %vm129_vm0, %v910_v40 }
 0x7a2   :  { %925 = dma.vmem_to_hbm [thread:$0]  %s918_s7, 256, %s920_s9, [#allocation3], %s1062_s3, %s1062_s3, %s1063_s10  }
 0x7a3   :  { %1057 = dma.done.wait [#allocation3], 256  }
 0x7a4   :  { %1058 = vsyncadd [#allocation3], 4294967040 }
 0x7a5   :  { %930 = vsyncpa [#allocation3], 1 }

</bundles_post_ra>
